<compile_context>
chip_gen: v7x
topology: tpu7x:2x2x1
jax: 0.10.0
libtpu: 0.0.40
codegen_flags: <defaults>
</compile_context>

<pallas_src>
import functools
import math

import jax
import jax.numpy as jnp
from jax.experimental import pallas as pl
from jax.experimental.pallas import tpu as pltpu


def attention_kernel(xq_ref, xkv_ref, wq_ref, wk_ref, wv_ref, wp_ref,
                     bq_ref, bk_ref, bv_ref, bp_ref, o_ref,
                     *, n_heads, compute_dtype):
    """One grid step == (one batch sample, one query tile). All operands resident in VMEM."""
    TQ = xq_ref.shape[1]
    TK = xkv_ref.shape[1]
    D = xq_ref.shape[2]
    H = n_heads
    hd = D // H
    cd = compute_dtype

    # (T, D) -> (D, T): one 2-D minor-dims transpose each (XLU slot; hidden under MXU work).
    xq_t = xq_ref[0].T.astype(cd)                                     # (D, TQ)
    if xkv_ref is xq_ref:            # trace-time check: query tile == full sequence
        xkv_t = xq_t
    else:
        xkv_t = xkv_ref[0].T.astype(cd)                               # (D, TK)

    # Lane-dense projections (contraction K = D fills the MXU). `scale` folded into wq/bq.
    q_t = jnp.dot(wq_ref[...], xq_t, preferred_element_type=jnp.float32) + bq_ref[...]   # (D, TQ)
    k_t = jnp.dot(wk_ref[...], xkv_t, preferred_element_type=jnp.float32) + bk_ref[...]  # (D, TK)
    v_t = jnp.dot(wv_ref[...], xkv_t, preferred_element_type=jnp.float32) + bv_ref[...]  # (D, TK)

    # Per-head views. head_dim is a multiple of the 8-row sublane tile, so these reshapes are
    # layout-preserving; only Q needs a batched minor-dims transpose.
    qh = jnp.swapaxes(q_t.reshape(H, hd, TQ), 1, 2).astype(cd)        # (H, TQ, hd)
    kh = k_t.reshape(H, hd, TK).astype(cd)                            # (H, hd, TK) == k_h^T
    vh = v_t.reshape(H, hd, TK).astype(cd)                            # (H, hd, TK) == v_h^T

    # scores[h] = q_h @ k_h^T (scale pre-applied): canonical head-batched matmul.
    scores = jax.lax.dot_general(qh, kh, (((2,), (1,)), ((0,), (0,))),
                                 preferred_element_type=jnp.float32)  # (H, TQ, TK)

    # Softmax over the HEADS axis (PyTorch: dot_p.softmax(dim=1) on (B, H, T, T)).
    # Kept in f32; leading-axis max/sum are cheap vreg-wise VALU reductions. Written so that
    # scores / e / attn are not all simultaneously live.
    m = jnp.max(scores, axis=0, keepdims=True)                        # (1, TQ, TK)
    e = jnp.exp(scores - m)                                           # (H, TQ, TK)
    attn = (e * pl.reciprocal(jnp.sum(e, axis=0, keepdims=True), approx=True)).astype(cd)
    # attn_drop: p = 0.0 -> identity.

    # wa[h] = attn[h] @ v_h  (contract the key axis against v_h^T's lane axis).
    wa = jax.lax.dot_general(attn, vh, (((2,), (2,)), ((0,), (0,))),
                             preferred_element_type=jnp.float32)      # (H, TQ, hd)

    # Output projection fused with the head concat: put the heads back on the feature
    # (sublane) axis in transposed space, then one dense (D, D) x (D, TQ) matmul.
    wa_t = jnp.swapaxes(wa, 1, 2).reshape(D, TQ).astype(cd)           # (D, TQ)
    out_t = jnp.dot(wp_ref[...], wa_t, preferred_element_type=jnp.float32) + bp_ref[...]
    o_ref[0] = out_t.T.astype(o_ref.dtype)                            # (TQ, D)
    # proj_drop: p = 0.0 -> identity.


def attention_pallas(x, w_qkv, b_qkv, w_proj, b_proj, n_heads, *,
                     compute_dtype=jnp.bfloat16, q_block_size=128):
    """x: (B, T, D); w_qkv: (3D, D); b_qkv: (3D,); w_proj: (D, D); b_proj: (D,).

    compute_dtype: dtype of the MXU operands (default bf16; accumulation and softmax math
    stay float32). Pass jnp.float32 for tight numerics.
    q_block_size: query tile length (multiple of 8) used when T > q_block_size.
    """
    B, T, D = x.shape
    H = n_heads
    hd = D // H
    scale = hd ** (-0.5)
    cd = jnp.dtype(compute_dtype) if compute_dtype is not None else jnp.dtype(x.dtype)
    f32 = jnp.float32

    # ---- one-time weight/bias layout prep (plain JAX, outside the kernel) ---------------
    # Kernel computes q^T = Wq @ x^T + bq, so the PyTorch (D_out, D_in) weights are used
    # as-is; `scale` is folded into the Q projection weights/bias.
    wq = (w_qkv[0 * D:1 * D].astype(f32) * scale).astype(cd)          # (D, D)
    wk = w_qkv[1 * D:2 * D].astype(cd)
    wv = w_qkv[2 * D:3 * D].astype(cd)
    wp = w_proj.astype(cd)                                            # (D, D)
    bq = (b_qkv[0 * D:1 * D].astype(f32) * scale).reshape(D, 1)
    bk = b_qkv[1 * D:2 * D].astype(f32).reshape(D, 1)
    bv = b_qkv[2 * D:3 * D].astype(f32).reshape(D, 1)
    bp = b_proj.astype(f32).reshape(D, 1)

    # ---- grid: (batch, query tiles); both independent -> "parallel" ---------------------
    if T <= q_block_size:
        TQ = T
    else:
        TQ = max(8, (q_block_size // 8) * 8)
    NQ = pl.cdiv(T, TQ)

    kernel = functools.partial(attention_kernel, n_heads=H, compute_dtype=cd)

    def const_spec(shape):
        # Constant across the whole grid: DMA once, single-buffered (no 2x VMEM).
        return pl.BlockSpec(shape, lambda b, qi: (0,) * len(shape),
                            pipeline_mode=pl.Buffered(1))

    if NQ == 1:
        x_inputs = (x,)
        x_specs = [pl.BlockSpec((1, T, D), lambda b, qi: (b, 0, 0))]
        body = lambda xq_ref, *rest: kernel(xq_ref, xq_ref, *rest)
    else:
        # Query tile for Q plus the full sequence for K/V (re-fetched only when b changes).
        x_inputs = (x, x)
        x_specs = [pl.BlockSpec((1, TQ, D), lambda b, qi: (b, qi, 0)),
                   pl.BlockSpec((1, T, D), lambda b, qi: (b, 0, 0))]
        body = kernel

    # ---- advisory cost + VMEM budget -----------------------------------------------------
    flops = 2 * B * T * D * (3 * D) + 4 * B * T * T * D + 2 * B * T * D * D
    transcendentals = B * H * T * T
    bytes_accessed = (2 * B * T * D) * jnp.dtype(x.dtype).itemsize \
        + 4 * D * D * cd.itemsize + 4 * D * 4
    cost = pl.CostEstimate(flops=int(flops), transcendentals=int(transcendentals),
                           bytes_accessed=int(bytes_accessed))

    try:
        vmem_cap = int(pltpu.get_tpu_info().vmem_capacity_bytes)
    except Exception:
        vmem_cap = 64 * 1024 * 1024        # conservative (v7x physical per-core VMEM)
    vmem_limit = int(min(48 * 1024 * 1024, (vmem_cap * 3) // 4))

    return pl.pallas_call(
        body,
        out_shape=jax.ShapeDtypeStruct((B, T, D), x.dtype),
        grid_spec=pltpu.PrefetchScalarGridSpec(
            num_scalar_prefetch=0,
            grid=(B, NQ),
            in_specs=x_specs + [
                const_spec((D, D)),   # Wq (scale folded)
                const_spec((D, D)),   # Wk
                const_spec((D, D)),   # Wv
                const_spec((D, D)),   # Wproj
                const_spec((D, 1)),   # bq (scale folded)
                const_spec((D, 1)),   # bk
                const_spec((D, 1)),   # bv
                const_spec((D, 1)),   # bproj
            ],
            out_specs=pl.BlockSpec((1, TQ, D), lambda b, qi: (b, qi, 0)),
        ),
        compiler_params=pltpu.CompilerParams(
            dimension_semantics=("parallel", "parallel"),
            vmem_limit_bytes=vmem_limit,
        ),
        cost_estimate=cost,
    )(*x_inputs, wq, wk, wv, wp, bq, bk, bv, bp)


def attention_ref(x, w_qkv, b_qkv, w_proj, b_proj, n_heads):
    """Pure-JAX mirror of the PyTorch forward (for verification)."""
    B, T, D = x.shape
    hd = D // n_heads
    scale = hd ** (-0.5)
    qkv = x @ w_qkv.T + b_qkv                                   # (B, T, 3D)
    qkv = qkv.reshape(B, T, 3, n_heads, hd).transpose(2, 0, 3, 1, 4)
    q, k, v = qkv[0], qkv[1], qkv[2]                            # (B, H, T, hd)
    dot_p = jnp.einsum('bhtd,bhsd->bhts', q, k) * scale         # (B, H, T, T)
    attn = jax.nn.softmax(dot_p, axis=1)                        # softmax over HEADS (dim=1)
    wa = jnp.einsum('bhts,bhsd->bhtd', attn, v)                 # (B, H, T, hd)
    wa = wa.transpose(0, 2, 1, 3).reshape(B, T, D)
    return wa @ w_proj.T + b_proj


if __name__ == "__main__":
    B, T, DIM, HEADS = 2, 8, 32, 4

    key = jax.random.PRNGKey(0)
    kx, kw1, kb1, kw2, kb2 = jax.random.split(key, 5)

    x = jax.random.normal(kx, (B, T, DIM), dtype=jnp.float32)
    # deterministic "nn.Linear"-style init (uniform in +/- 1/sqrt(fan_in))
    bound = 1.0 / math.sqrt(DIM)
    w_qkv = jax.random.uniform(kw1, (3 * DIM, DIM), jnp.float32, -bound, bound)
    b_qkv = jax.random.uniform(kb1, (3 * DIM,), jnp.float32, -bound, bound)
    w_proj = jax.random.uniform(kw2, (DIM, DIM), jnp.float32, -bound, bound)
    b_proj = jax.random.uniform(kb2, (DIM,), jnp.float32, -bound, bound)

    ref = attention_ref(x, w_qkv, b_qkv, w_proj, b_proj, HEADS)

    # 1) f32 MXU operands: tight check (only the approximate-reciprocal softmax
    #    normalization differs from the exact reference).
    out_f32 = jax.block_until_ready(
        attention_pallas(x, w_qkv, b_qkv, w_proj, b_proj, HEADS, compute_dtype=jnp.float32))
    assert out_f32.shape == (B, T, DIM)
    assert jnp.allclose(out_f32, ref, rtol=3e-3, atol=3e-3), "f32 path mismatch vs reference"

    # 2) default path: bf16 MXU operands (f32 accumulation + f32 softmax): looser check.
    out_bf16 = jax.block_until_ready(
        attention_pallas(x, w_qkv, b_qkv, w_proj, b_proj, HEADS))
    assert jnp.allclose(out_bf16, ref, rtol=5e-2, atol=5e-2), "bf16 path mismatch vs reference"

    # 3) exercise the query-tiled grid path (grid=(B, T//TQ) with TQ < T).
    T2 = 16
    x2 = jax.random.normal(jax.random.PRNGKey(1), (B, T2, DIM), dtype=jnp.float32)
    ref2 = attention_ref(x2, w_qkv, b_qkv, w_proj, b_proj, HEADS)
    out2 = jax.block_until_ready(
        attention_pallas(x2, w_qkv, b_qkv, w_proj, b_proj, HEADS,
                         compute_dtype=jnp.float32, q_block_size=8))
    assert jnp.allclose(out2, ref2, rtol=3e-3, atol=3e-3), "tiled path mismatch vs reference"

    print("KERNEL_OK")
</pallas_src>

<mosaic_0001>
module attributes {stable_mosaic.version = 11 : i64} {
  func.func @_lambda_(%arg0: i32, %arg1: i32, %arg2: memref<1x8x32xf32, #tpu.memory_space<vmem>>, %arg3: memref<32x32xf32, #tpu.memory_space<vmem>>, %arg4: memref<32x32xf32, #tpu.memory_space<vmem>>, %arg5: memref<32x32xf32, #tpu.memory_space<vmem>>, %arg6: memref<32x32xf32, #tpu.memory_space<vmem>>, %arg7: memref<32x1xf32, #tpu.memory_space<vmem>>, %arg8: memref<32x1xf32, #tpu.memory_space<vmem>>, %arg9: memref<32x1xf32, #tpu.memory_space<vmem>>, %arg10: memref<32x1xf32, #tpu.memory_space<vmem>>, %arg11: memref<1x8x32xf32, #tpu.memory_space<vmem>>) attributes {dimension_semantics = [#tpu.dimension_semantics<parallel>, #tpu.dimension_semantics<parallel>], iteration_bounds = array<i64: 2, 1>, scalar_prefetch = 0 : i64, scratch_operands = 0 : i64, tpu.core_type = #tpu.core_type<tc>, window_params = [{transform_indices = @transform_0, window_bounds = array<i64: 1, 8, 32>}, {pipeline_mode = #tpu.pipeline_mode<synchronous>, transform_indices = @transform_1, window_bounds = array<i64: 32, 32>}, {pipeline_mode = #tpu.pipeline_mode<synchronous>, transform_indices = @transform_2, window_bounds = array<i64: 32, 32>}, {pipeline_mode = #tpu.pipeline_mode<synchronous>, transform_indices = @transform_3, window_bounds = array<i64: 32, 32>}, {pipeline_mode = #tpu.pipeline_mode<synchronous>, transform_indices = @transform_4, window_bounds = array<i64: 32, 32>}, {pipeline_mode = #tpu.pipeline_mode<synchronous>, transform_indices = @transform_5, window_bounds = array<i64: 32, 1>}, {pipeline_mode = #tpu.pipeline_mode<synchronous>, transform_indices = @transform_6, window_bounds = array<i64: 32, 1>}, {pipeline_mode = #tpu.pipeline_mode<synchronous>, transform_indices = @transform_7, window_bounds = array<i64: 32, 1>}, {pipeline_mode = #tpu.pipeline_mode<synchronous>, transform_indices = @transform_8, window_bounds = array<i64: 32, 1>}, {transform_indices = @transform_9, window_bounds = array<i64: 1, 8, 32>}]} {
    %c0 = arith.constant 0 : index
    %c0_0 = arith.constant 0 : index
    %c0_1 = arith.constant 0 : index
    %0 = vector.load %arg2[%c0, %c0_0, %c0_1] : memref<1x8x32xf32, #tpu.memory_space<vmem>>, vector<1x8x32xf32>
    %1 = vector.shape_cast %0 : vector<1x8x32xf32> to vector<8x32xf32>
    %2 = tpu.transpose %1, [1, 0] : vector<8x32xf32> -> vector<32x8xf32>
    %c0_2 = arith.constant 0 : index
    %c0_3 = arith.constant 0 : index
    %3 = vector.load %arg3[%c0_2, %c0_3] : memref<32x32xf32, #tpu.memory_space<vmem>>, vector<32x32xf32>
    %cst = arith.constant dense<0.000000e+00> : vector<32x8xf32>
    %4 = tpu.matmul %3, %2, %cst {dimension_numbers = #tpu.dot_dimension_numbers<[1], [0], [0], [1], [0, 0, 1, 1], [], []>} : vector<32x32xf32>, vector<32x8xf32>, vector<32x8xf32> -> vector<32x8xf32>
    %c0_4 = arith.constant 0 : index
    %c0_5 = arith.constant 0 : index
    %5 = vector.load %arg7[%c0_4, %c0_5] : memref<32x1xf32, #tpu.memory_space<vmem>>, vector<32x1xf32>
    %6 = vector.broadcast %5 : vector<32x1xf32> to vector<32x8xf32>
    %7 = arith.addf %4, %6 : vector<32x8xf32>
    %c0_6 = arith.constant 0 : index
    %c0_7 = arith.constant 0 : index
    %8 = vector.load %arg4[%c0_6, %c0_7] : memref<32x32xf32, #tpu.memory_space<vmem>>, vector<32x32xf32>
    %cst_8 = arith.constant dense<0.000000e+00> : vector<32x8xf32>
    %9 = tpu.matmul %8, %2, %cst_8 {dimension_numbers = #tpu.dot_dimension_numbers<[1], [0], [0], [1], [0, 0, 1, 1], [], []>} : vector<32x32xf32>, vector<32x8xf32>, vector<32x8xf32> -> vector<32x8xf32>
    %c0_9 = arith.constant 0 : index
    %c0_10 = arith.constant 0 : index
    %10 = vector.load %arg8[%c0_9, %c0_10] : memref<32x1xf32, #tpu.memory_space<vmem>>, vector<32x1xf32>
    %11 = vector.broadcast %10 : vector<32x1xf32> to vector<32x8xf32>
    %12 = arith.addf %9, %11 : vector<32x8xf32>
    %c0_11 = arith.constant 0 : index
    %c0_12 = arith.constant 0 : index
    %13 = vector.load %arg5[%c0_11, %c0_12] : memref<32x32xf32, #tpu.memory_space<vmem>>, vector<32x32xf32>
    %cst_13 = arith.constant dense<0.000000e+00> : vector<32x8xf32>
    %14 = tpu.matmul %13, %2, %cst_13 {dimension_numbers = #tpu.dot_dimension_numbers<[1], [0], [0], [1], [0, 0, 1, 1], [], []>} : vector<32x32xf32>, vector<32x8xf32>, vector<32x8xf32> -> vector<32x8xf32>
    %c0_14 = arith.constant 0 : index
    %c0_15 = arith.constant 0 : index
    %15 = vector.load %arg9[%c0_14, %c0_15] : memref<32x1xf32, #tpu.memory_space<vmem>>, vector<32x1xf32>
    %16 = vector.broadcast %15 : vector<32x1xf32> to vector<32x8xf32>
    %17 = arith.addf %14, %16 : vector<32x8xf32>
    %18 = vector.shape_cast %7 : vector<32x8xf32> to vector<4x8x8xf32>
    %19 = tpu.transpose %18, [0, 2, 1] : vector<4x8x8xf32> -> vector<4x8x8xf32>
    %20 = vector.shape_cast %12 : vector<32x8xf32> to vector<4x8x8xf32>
    %21 = vector.shape_cast %17 : vector<32x8xf32> to vector<4x8x8xf32>
    %cst_16 = arith.constant dense<0.000000e+00> : vector<4x8x8xf32>
    %22 = tpu.matmul %19, %20, %cst_16 {dimension_numbers = #tpu.dot_dimension_numbers<[2], [1], [1], [2], [0, 0, 0, 1, 1, 2], [0], [0]>} : vector<4x8x8xf32>, vector<4x8x8xf32>, vector<4x8x8xf32> -> vector<4x8x8xf32>
    %cst_17 = arith.constant dense<0xFF800000> : vector<8x8xf32>
    %23 = vector.multi_reduction <maximumf>, %22, %cst_17 [0] : vector<4x8x8xf32> to vector<8x8xf32>
    %24 = vector.shape_cast %23 : vector<8x8xf32> to vector<1x8x8xf32>
    %25 = vector.broadcast %24 : vector<1x8x8xf32> to vector<4x8x8xf32>
    %26 = arith.subf %22, %25 : vector<4x8x8xf32>
    %27 = math.exp %26 : vector<4x8x8xf32>
    %cst_18 = arith.constant dense<0.000000e+00> : vector<8x8xf32>
    %28 = vector.multi_reduction <add>, %27, %cst_18 [0] : vector<4x8x8xf32> to vector<8x8xf32>
    %29 = vector.shape_cast %28 : vector<8x8xf32> to vector<1x8x8xf32>
    %30 = tpu.reciprocal %29 {approx = true} : vector<1x8x8xf32> -> vector<1x8x8xf32>
    %31 = vector.broadcast %30 : vector<1x8x8xf32> to vector<4x8x8xf32>
    %32 = arith.mulf %27, %31 : vector<4x8x8xf32>
    %cst_19 = arith.constant dense<0.000000e+00> : vector<4x8x8xf32>
    %33 = tpu.matmul %32, %21, %cst_19 {dimension_numbers = #tpu.dot_dimension_numbers<[2], [2], [1], [1], [0, 0, 0, 1, 1, 1], [0], [0]>} : vector<4x8x8xf32>, vector<4x8x8xf32>, vector<4x8x8xf32> -> vector<4x8x8xf32>
    %34 = tpu.transpose %33, [0, 2, 1] : vector<4x8x8xf32> -> vector<4x8x8xf32>
    %35 = vector.shape_cast %34 : vector<4x8x8xf32> to vector<32x8xf32>
    %c0_20 = arith.constant 0 : index
    %c0_21 = arith.constant 0 : index
    %36 = vector.load %arg6[%c0_20, %c0_21] : memref<32x32xf32, #tpu.memory_space<vmem>>, vector<32x32xf32>
    %cst_22 = arith.constant dense<0.000000e+00> : vector<32x8xf32>
    %37 = tpu.matmul %36, %35, %cst_22 {dimension_numbers = #tpu.dot_dimension_numbers<[1], [0], [0], [1], [0, 0, 1, 1], [], []>} : vector<32x32xf32>, vector<32x8xf32>, vector<32x8xf32> -> vector<32x8xf32>
    %c0_23 = arith.constant 0 : index
    %c0_24 = arith.constant 0 : index
    %38 = vector.load %arg10[%c0_23, %c0_24] : memref<32x1xf32, #tpu.memory_space<vmem>>, vector<32x1xf32>
    %39 = vector.broadcast %38 : vector<32x1xf32> to vector<32x8xf32>
    %40 = arith.addf %37, %39 : vector<32x8xf32>
    %41 = tpu.transpose %40, [1, 0] : vector<32x8xf32> -> vector<8x32xf32>
    %c0_25 = arith.constant 0 : index
    %c0_26 = arith.constant 0 : index
    %c0_27 = arith.constant 0 : index
    %42 = vector.load %arg11[%c0_25, %c0_26, %c0_27] : memref<1x8x32xf32, #tpu.memory_space<vmem>>, vector<1x8x32xf32>
    %43 = vector.shape_cast %42 : vector<1x8x32xf32> to vector<8x32xf32>
    %44 = vector.shape_cast %41 : vector<8x32xf32> to vector<1x8x32xf32>
    tpu.vector_store %arg11[%c0_25, %c0_26, %c0_27], %44 {strides = array<i32>} : memref<1x8x32xf32, #tpu.memory_space<vmem>>, vector<1x8x32xf32>,
    return
  }
  func.func @transform_0(%arg0: i32, %arg1: i32) -> (i32, i32, i32) {
    %c0_i32 = arith.constant 0 : i32
    %c0_i32_0 = arith.constant 0 : i32
    %c0_i32_1 = arith.constant 0 : i32
    return %arg0, %c0_i32, %c0_i32_0 : i32, i32, i32
  }
  func.func @transform_1(%arg0: i32, %arg1: i32) -> (i32, i32) {
    %c0_i32 = arith.constant 0 : i32
    %c0_i32_0 = arith.constant 0 : i32
    %c0_i32_1 = arith.constant 0 : i32
    return %c0_i32, %c0_i32_0 : i32, i32
  }
  func.func @transform_2(%arg0: i32, %arg1: i32) -> (i32, i32) {
    %c0_i32 = arith.constant 0 : i32
    %c0_i32_0 = arith.constant 0 : i32
    %c0_i32_1 = arith.constant 0 : i32
    return %c0_i32, %c0_i32_0 : i32, i32
  }
  func.func @transform_3(%arg0: i32, %arg1: i32) -> (i32, i32) {
    %c0_i32 = arith.constant 0 : i32
    %c0_i32_0 = arith.constant 0 : i32
    %c0_i32_1 = arith.constant 0 : i32
    return %c0_i32, %c0_i32_0 : i32, i32
  }
  func.func @transform_4(%arg0: i32, %arg1: i32) -> (i32, i32) {
    %c0_i32 = arith.constant 0 : i32
    %c0_i32_0 = arith.constant 0 : i32
    %c0_i32_1 = arith.constant 0 : i32
    return %c0_i32, %c0_i32_0 : i32, i32
  }
  func.func @transform_5(%arg0: i32, %arg1: i32) -> (i32, i32) {
    %c0_i32 = arith.constant 0 : i32
    %c0_i32_0 = arith.constant 0 : i32
    %c0_i32_1 = arith.constant 0 : i32
    return %c0_i32, %c0_i32_0 : i32, i32
  }
  func.func @transform_6(%arg0: i32, %arg1: i32) -> (i32, i32) {
    %c0_i32 = arith.constant 0 : i32
    %c0_i32_0 = arith.constant 0 : i32
    %c0_i32_1 = arith.constant 0 : i32
    return %c0_i32, %c0_i32_0 : i32, i32
  }
  func.func @transform_7(%arg0: i32, %arg1: i32) -> (i32, i32) {
    %c0_i32 = arith.constant 0 : i32
    %c0_i32_0 = arith.constant 0 : i32
    %c0_i32_1 = arith.constant 0 : i32
    return %c0_i32, %c0_i32_0 : i32, i32
  }
  func.func @transform_8(%arg0: i32, %arg1: i32) -> (i32, i32) {
    %c0_i32 = arith.constant 0 : i32
    %c0_i32_0 = arith.constant 0 : i32
    %c0_i32_1 = arith.constant 0 : i32
    return %c0_i32, %c0_i32_0 : i32, i32
  }
  func.func @transform_9(%arg0: i32, %arg1: i32) -> (i32, i32, i32) {
    %c0_i32 = arith.constant 0 : i32
    %c0_i32_0 = arith.constant 0 : i32
    return %arg0, %arg1, %c0_i32 : i32, i32, i32
  }
}

</mosaic_0001>

<bundles_post_ra>
// kernel: tpu_custom_call.1
= control target key start
LH: loop header
LB: loop body
LE: loop exit
PB: predicated region body
PF: predicated region fallthrough
CT: control target
= control target key end

     0   :  { %14 = vsyncpa [#allocation3], 0  ;;  %s2652_s0 = inlined_call_operand.hbm [shape: f32[2,8,32], index: 0, kind: input, shape index: {}]   ;;  %s2653_s1 = inlined_call_operand.vmem [shape: f32[32,32], index: 1, kind: input, shape index: {}]   ;;  %s2654_s2 = inlined_call_operand.vmem [shape: f32[32,32], index: 2, kind: input, shape index: {}]   ;;  %s2655_s3 = inlined_call_operand.vmem [shape: f32[32,32], index: 3, kind: input, shape index: {}]   ;;  %s2656_s4 = inlined_call_operand.vmem [shape: f32[32,32], index: 4, kind: input, shape index: {}]   ;;  %s2657_s5 = inlined_call_operand.vmem [shape: f32[32,1], index: 5, kind: input, shape index: {}]   ;;  %s2658_s6 = inlined_call_operand.vmem [shape: f32[32,1], index: 6, kind: input, shape index: {}]   ;;  %s2659_s7 = inlined_call_operand.vmem [shape: f32[32,1], index: 7, kind: input, shape index: {}]   ;;  %s2660_s8 = inlined_call_operand.vmem [shape: f32[32,1], index: 8, kind: input, shape index: {}]   ;;  %s2661_s9 = inlined_call_operand.hbm [shape: f32[2,8,32], index: 9, kind: output, shape index: {}]  }
   0x1   :  { %16 = vsyncpa [#allocation3 + $0x1], 0 }
   0x2   :  { %17 = vsyncpa [#allocation4], 0 }
   0x3   :  { %19 = vsyncpa [#allocation4 + $0x1], 0  ;;  %s2307_s30 = smov 0   ;;  %s2309_s10 = smov 0  }
   0x4   :  { %s2311_s11 = smov 0   ;;  %s2313_s12 = smov 0  }
   0x5   :  { %s2315_s13 = smov 0   ;;  %s2317_s14 = smov 0  }
   0x6 LB: > { %s1878_s15 = sadd.s32 4294967295, %s2250_s14   ;;  %s1879_s16 = sadd.s32 4294967294, %s2250_s14   ;;  %s2250_s14 = sphi %s2317_s14, %s25_s14   ;;  %s2246_s13 = sphi %s2315_s13, %s2680_s13   ;;  %s2242_s12 = sphi %s2313_s12, %s2679_s12   ;;  %s2238_s11 = sphi %s2311_s11, %s2678_s11   ;;  %s2234_s10 = sphi %s2309_s10, %s2677_s10   ;;  %s2230_s30 = sphi %s2307_s30, %s2676_s30  }
   0x7   : > { %s37_s17 = sadd.s32 1, %s2246_s13  ;;  %s44_s18 = sadd.s32 1, %s2238_s11 }
   0x8   : > { %p39_p0 = scmp.ge.s32.totalorder %s37_s17, 2  ;;  %p51_p1 = scmp.ne.s32.totalorder %s2238_s11, %s2234_s10 }
   0x9   : > { %p52_p2 = scmp.eq.s32.totalorder %s2250_s14, 0  ;;  %p57_p3 = scmp.ne.s32.totalorder %s2234_s10, %s2230_s30 }
   0xa   : > { %s2682_s17 = smov (%p39_p0, %s37_s17), 0  ;;  %p58_p5 = scmp.eq.s32.totalorder %s1878_s15, 0 }
   0xb   : > { %2664 = sst [smem:[#allocation8_spill]] %s2682_s17  ;;  %p2348_p4 = por %p52_p2, %p51_p1 }
   0xc   : > { %s41_s20 = ssub.s32 %s2246_s13, %s2682_s17  ;;  %p251_p6 = scmp.eq.s32.totalorder %s1878_s15, 1 }
   0xd   : > { %p42_p7 = scmp.eq.s32.totalorder %s41_s20, 0  ;;  %p2354_p8 = por %p58_p5, %p57_p3 }
   0xe   : > { %p2358_p9 = por %p251_p6, %p51_p1  ;;  %p257_p10 = scmp.eq.s32.totalorder %s1879_s16, 1 }
   0xf   : > { %s2363_s23 = scalar_select %p42_p7, %s2238_s11, %s44_s18  }
  0x10   : > { %s2667_s22 = scalar_select %p2358_p9, 1, 0 }
  0x11   : > { %p2365_p11 = por %p257_p10, %p57_p3  ;;  %p2059_p13 = scmp.lt.s32.totalorder %s2250_s14, 2 }
  0x12   : > { %s301_s25 = sand.u32 1, %s2238_s11   ;;  %s1883_s27 = sshll.u32 %s2246_s13, 7 }
  0x13   : > { %s2668_s24 = scalar_select %p2365_p11, 1, 0 }
  0x14   : > { %s1882_s26 = sshll.u32 %s301_s25, 3  ;;  %s2376_s15 = scalar_lea.hbm %s2652_s0, %s1883_s27 }
  0x15   : > { %s305_s16 = scalar_lea.vmem [#allocation2], %s1882_s26  ;;  %p2382_p0 = pnand %p2059_p13, %p2348_p4 }
  0x16   : > { %s312_s18 = sshll.u32 %s305_s16, 4  ;;  %s302_s28 = scalar_lea.sflag [#allocation3], %s301_s25  ;;  %s2378_s18 = int_to_ptr.vmem [resolvable:$true] %s312_s18 }
  0x17   : > { %s2138_s27 = scalar_lea.hbm %s2376_s15, 128  ;;  %p2140_p5 = pneg %p2382_p0 }
  0x18   : > { %p2139_p3 = scmp.ne.s32.totalorder %s2376_s15, %s2138_s27  ;;  %s2143_s19 = scalar_lea.hbm %s2652_s0, 256 }
  0x19   : > { %p2144_p4 = scmp.lt.u32.totalorder %s2376_s15, %s2652_s0  ;;  %p2145_p10 = scmp.lt.u32.totalorder %s2143_s19, %s2138_s27 }
  0x1a   : > { %p2141_p6 = pnand %p2140_p5, %p2139_p3  ;;  %p2147_p12 = scmp.lt.u32.totalorder %s2138_s27, %s2376_s15 }
  0x1b   : > { %p2146_p13 = por %p2145_p10, %p2144_p4 }
  0x1c   : > { %p2142_p7 = pneg %p2141_p6 }
  0x1d   : > { %p2148_p1 = por %p2147_p12, %p2146_p13 }
  0x1f   : > { %p2149_p2 = pnand %p2148_p1, %p2142_p7 }
  0x21   : > { %2152 = shalt.err (!%p2149_p2)
}
  0x22   : > { %s2153_s25 = scalar_lea.vmem %s2378_s18, 128  ;;  %s2252_s26 = smov [#allocation2]  }
  0x23   : > { %p2154_p3 = scmp.ne.s32.totalorder %s2378_s18, %s2153_s25  ;;  %s2158_s29 = sshll.u32 %s2252_s26, 4  ;;  %s2159_s29 = int_to_ptr.vmem [resolvable:$false] %s2158_s29 }
  0x24   : > { %s2160_s17 = scalar_lea.vmem %s2159_s29, 256  ;;  %p2161_p9 = scmp.lt.s32.totalorder %s2378_s18, %s2159_s29 }
  0x25   : > { %p2156_p6 = pnand %p2154_p3, %p2140_p5  ;;  %p2162_p4 = scmp.lt.s32.totalorder %s2160_s17, %s2153_s25 }
  0x27   : > { %p2157_p11 = pneg %p2156_p6  ;;  %p2163_p10 = por %p2162_p4, %p2161_p9 }
  0x29   : > { %p2164_p12 = pnand %p2163_p10, %p2157_p11 }
  0x2b   : > { %2167 = shalt.err (!%p2164_p12)
}
  0x2c   : > { %2054 = dma.hbm_to_vmem [thread:$0]  (!%p2382_p0), %s2376_s15, 128, %s2378_s18, %s302_s28  }
  0x2d   : > { %p2670_p1 = scmp.lt.s32.totalorder %s2250_s14, 3  ;;  %p2671_p2 = scmp.ge.s32.totalorder %s2250_s14, 1 }
  0x2f   : > { %p318_p5 = pnand %p2671_p2, %p2670_p1 }
  0x30   : > { %s2418_s27 = sand.u32 (!%p318_p5), 1, %s2234_s10  }
  0x31   : > { %321 = sbr.rel (%p318_p5) target bundleno = 1381 (0x565), region = 56  ;;  %s1885_s19 = sshll.u32 (!%p318_p5), %s2418_s27, 3 }
  0x32   : > { %s324_s16 = scalar_lea.sflag (!%p318_p5), [#allocation3], %s2418_s27  ;;  %s327_s20 = scalar_lea.vmem (!%p318_p5), [#allocation2], %s1885_s19 }
  0x38   : > { %2221 = dma.done.wait (%p2354_p8), %s324_s16, 128  }
  0x39   : > { %2223 = vsyncadd (%p2354_p8), %s324_s16, 4294967168  ;;  %v2253_v0 = vmov 0   ;;  %vm391_vm0 = vcmask 261120   ;;  %v362_v1 = vld [vmem:[%s327_s20] sm:$0xff]  ;;  %v365_v4 = vld [vmem:[%s2653_s1 + $0x10] sm:$0xff]  ;;  %v2254_v22 = vmov 0.0  }
  0x3a   : > { %2112 = vset.pattern.permute.xlu0 %v2253_v0  ;;  %2113 = vset.pattern.permute.xlu1 %v2253_v0  ;;  %v363_v2 = vld [vmem:[%s2653_s1] sm:$0xff]  ;;  %v364_v3 = vld [vmem:[%s2653_s1 + $0x8] sm:$0xff]  ;;  %v369_v6 = vld [vmem:[%s2657_s5 + $0x10] sm:$0xff]  ;;  %vm2255_vm1 = vmmov 0   ;;  %vm870_vm2 = vcmask 64512   ;;  %s1919_s21 = sshll.u32 %s2242_s12, 7 }
  0x3b   : > { %1961 = vmatprep.subr.msk.mxu1 %vm391_vm0, %v362_v1  ;;  %1963 = vmatprep.mubr.msk.f32.mxu1 %vm391_vm0, %v363_v2  ;;  %v367_v5 = vld [vmem:[%s2657_s5] sm:$0xff]  ;;  %v368_v7 = vld [vmem:[%s2657_s5 + $0x8] sm:$0xff]  ;;  %v370_v8 = vld [vmem:[%s2657_s5 + $0x18] sm:$0xff]  ;;  %s361_s26 = scalar_lea.vmem [#allocation5], %s1885_s19  ;;  %s2602_s20 = scalar_lea.hbm %s2661_s9, %s1919_s21 }
  0x3c   : > { %1962 = vmatpush3.xpose.msk.msra.mxu1 %vm391_vm0, %v362_v1  ;;  %1977 = vmatprep.subr.msk.mxu0 %vm391_vm0, %v362_v1  ;;  %v617_v9 = vld [vmem:[%s2655_s3] sm:$0xff]  ;;  %v366_v10 = vld [vmem:[%s2653_s1 + $0x18] sm:$0xff]  ;;  %v618_v11 = vld [vmem:[%s2655_s3 + $0x8] sm:$0xff]  ;;  %s1799_s29 = sshll.u32 %s361_s26, 4  ;;  %s1785_s15 = scalar_lea.sflag [#allocation4], %s2418_s27  ;;  %s2604_s29 = int_to_ptr.vmem [resolvable:$true] %s1799_s29 }
  0x3d   : > { %1969 = vmatprep.subr.msk.mxu1 %vm391_vm0, %v362_v1  ;;  %1978 = vmatpush3.xpose.msk.msra.mxu0 %vm391_vm0, %v362_v1  ;;  %v492_v12 = vld [vmem:[%s2654_s2] sm:$0xff]  ;;  %v619_v13 = vld [vmem:[%s2655_s3 + $0x10] sm:$0xff]  ;;  %v497_v15 = vld [vmem:[%s2658_s6 + $0x8] sm:$0xff]  ;;  %s2168_s18 = scalar_lea.vmem %s2604_s29, 128  ;;  %p2672_p9 = scmp.ne.s32.totalorder %s2667_s22, 0 }
  0x3e   : > { %373 = vperm.xlu0 %2112, %v367_v5   ;;  %383 = vperm.xlu1 %2113, %v369_v6   ;;  %v496_v14 = vld [vmem:[%s2658_s6] sm:$0xff]  ;;  %v493_v16 = vld [vmem:[%s2654_s2 + $0x8] sm:$0xff]  ;;  %v620_v17 = vld [vmem:[%s2655_s3 + $0x18] sm:$0xff]  ;;  %p2169_p8 = scmp.ne.s32.totalorder %s2604_s29, %s2168_s18  ;;  %s2256_s12 = smov [#allocation5]  }
  0x3f   : > { %1964 = vmatmul.mubr.msk.f32.vlgmr.msra.gmra.mrb[0].mxu1 %vm391_vm0, %v364_v3  ;;  %1979 = vmatprep.mubr.msk.f32.mxu0 %vm391_vm0, %v617_v9  ;;  %v494_v18 = vld [vmem:[%s2654_s2 + $0x10] sm:$0xff]  ;;  %v499_v20 = vld [vmem:[%s2658_s6 + $0x18] sm:$0xff]  ;;  %v622_v44 = vld [vmem:[%s2659_s7 + $0x8] sm:$0xff]  ;;  %s2172_s19 = sshll.u32 %s2256_s12, 4  ;;  %s2173_s19 = int_to_ptr.vmem [resolvable:$false] %s2172_s19 }
  0x40   : > { %1966 = vmatprep.mubr.msk.f32.mxu1 %vm391_vm0, %v365_v4  ;;  %1970 = vmatpush3.xpose.msk.msra.mxu1 %vm391_vm0, %v362_v1  ;;  %v498_v19 = vld [vmem:[%s2658_s6 + $0x10] sm:$0xff]  ;;  %v495_v21 = vld [vmem:[%s2654_s2 + $0x18] sm:$0xff]  ;;  %v621_v50 = vld [vmem:[%s2659_s7] sm:$0xff]  ;;  %p2170_p11 = pnand %p2169_p8, %p2672_p9  ;;  %s2174_s28 = scalar_lea.vmem %s2173_s19, 256 }
  0x41   : > { %1980 = vmatmul.mubr.msk.f32.vlgmr.msra.gmra.mrb[0].mxu0 %vm391_vm0, %v618_v11  ;;  %1985 = vmatprep.subr.mxu1 %v2254_v22  ;;  %v623_v46 = vld [vmem:[%s2659_s7 + $0x10] sm:$0xff]  ;;  %v624_v49 = vld [vmem:[%s2659_s7 + $0x18] sm:$0xff]  ;;  %p2175_p7 = scmp.lt.s32.totalorder %s2604_s29, %s2173_s19  ;;  %p2176_p13 = scmp.lt.s32.totalorder %s2174_s28, %s2168_s18 }
  0x42   : > { %378 = vperm.xlu0 %2112, %v368_v7   ;;  %388 = vperm.xlu1 %2113, %v370_v8   ;;  %p2171_p0 = pneg %p2170_p11 }
  0x43   : > { %1967 = vmatmul.mubr.msk.f32.gmra.mrb[2].mxu1 %vm391_vm0, %v366_v10  ;;  %1982 = vmatprep.mubr.msk.f32.mxu0 %vm391_vm0, %v619_v13  ;;  %p2177_p3 = por %p2176_p13, %p2175_p7 }
  0x44   : > { %1971 = vmatprep.mubr.msk.f32.mxu1 %vm391_vm0, %v492_v12  ;;  %1995 = vmatprep.subr.mxu0 %v2254_v22 }
  0x45   : > { %1983 = vmatmul.mubr.msk.f32.gmra.mrb[2].mxu0 %vm391_vm0, %v620_v17  ;;  %p2178_p6 = pnand %p2177_p3, %p2171_p0 }
  0x46   : > { %502 = vperm.xlu0 %2112, %v496_v14   ;;  %507 = vperm.xlu1 %2113, %v497_v15  }
  0x47   : > { %1972 = vmatmul.mubr.msk.f32.vlgmr.msra.gmra.mrb[4].mxu1 %vm391_vm0, %v493_v16  ;;  %1997 = vmatprep.mubr.msk.f32.mxu0 %vm2255_vm1, %v2254_v22 }
  0x48   : > { %1974 = vmatprep.mubr.msk.f32.mxu1 %vm391_vm0, %v494_v18 }
  0x4a   : > { %512 = vperm.xlu0 %2112, %v498_v19   ;;  %517 = vperm.xlu1 %2113, %v499_v20  }
  0x4b   : > { %1975 = vmatmul.mubr.msk.f32.gmra.mrb[6].mxu1 %vm391_vm0, %v495_v21 }
  0x4c   : > { %1987 = vmatprep.mubr.msk.f32.mxu1 %vm2255_vm1, %v2254_v22 }
  0xbd   : > { %v374_v23 = vpop.permute.xlu0 %373  ;;  %v384_v29 = vpop.permute.xlu1 %383 }
  0xc1   : > { %v379_v24 = vpop.permute.xlu0 %378  ;;  %v389_v35 = vpop.permute.xlu1 %388 }
  0xc5   : > { %v503_v32 = vpop.permute.xlu0 %502  ;;  %v508_v51 = vpop.permute.xlu1 %507 }
  0xc9   : > { %v513_v39 = vpop.permute.xlu0 %512  ;;  %v518_v52 = vpop.permute.xlu1 %517 }
 0x112   : > { %v1965_v25 = vpop.f32.mrb[0].mxu1 }
 0x113   : > { %v479_v26 = vadd.f32 %v1965_v25, %v379_v24  ;;  %v473_v27 = vpop.f32.mrb[1].mxu1 }
 0x114   : > { %v474_v28 = vadd.f32 %v473_v27, %v374_v23  ;;  %v1981_v42 = vpop.f32.mrb[0].mxu0 }
 0x115   : > { %774 = vxpose.xlu1.b32.start.end [1/1] (short) (narrow) %v479_v26, 8  ;;  %v723_v45 = vpop.f32.mrb[1].mxu0 }
 0x116   : > { %v1968_v30 = vpop.f32.mrb[2].mxu1  ;;  %742 = vxpose.xlu0.b32.start.end [1/1] (short) (narrow) %v474_v28, 8 }
 0x117   : > { %v483_v31 = vpop.f32.mrb[3].mxu1  ;;  %v489_v37 = vadd.f32 %v1968_v30, %v389_v35 }
 0x118   : > { %v484_v33 = vadd.f32 %v483_v31, %v384_v29  ;;  %v2520_v47 = vpop.f32.mrb[2].mxu0 }
 0x119   : > { %v2522_v48 = vpop.f32.mrb[3].mxu0 }
 0x11a   : > { %v1973_v34 = vpop.f32.mrb[4].mxu1  ;;  %806 = vxpose.xlu0.b32.start.end [1/1] (short) (narrow) %v484_v33, 8 }
 0x11b   : > { %v598_v36 = vpop.f32.mrb[5].mxu1  ;;  %v604_v53 = vadd.f32 %v1973_v34, %v508_v51 }
 0x11c   : > { %v599_v38 = vadd.f32 %v598_v36, %v503_v32 }
 0x11e   : > { %v1976_v40 = vpop.f32.mrb[6].mxu1  ;;  %1986 = vmatpush3.msra.mxu1 %v599_v38  ;;  %838 = vxpose.xlu0.b32.start.end [1/1] (short) (narrow) %v489_v37, 8 }
 0x11f   : > { %v608_v41 = vpop.f32.mrb[7].mxu1  ;;  %1990 = vmatprep.subr.mxu1 %v2254_v22  ;;  %v614_v56 = vadd.f32 %v1976_v40, %v518_v52 }
 0x120   : > { %v609_v43 = vadd.f32 %v608_v41, %v513_v39 }
 0x122   : > { %1996 = vmatpush3.msra.mxu0 %v609_v43 }
 0x123   : > { %2005 = vmatprep.subr.mxu0 %v2254_v22 }
 0x133   : > { %632 = vperm.xlu1 %2113, %v622_v44  }
 0x137   : > { %637 = vperm.xlu1 %2113, %v623_v46  }
 0x13b   : > { %642 = vperm.xlu1 %2113, %v624_v49  }
 0x147   : > { %627 = vperm.xlu0 %2112, %v621_v50  }
 0x195   : > { %v790_v55 = vpop.trf.xlu1 }
 0x196   : > { %v758_v54 = vpop.trf.xlu0 }
 0x197   : > { %1988 = vmatmul.mubr.msk.f32.vlgmr.msra.gmra.mrb[8].mxu1 %vm870_vm2, %v758_v54  ;;  %v1633_v54 = vld [vmem:[%s2660_s8 + $0x18] sm:$0xff] }
 0x198   : > { %1991 = vmatpush3.msra.mxu1 %v604_v53  ;;  %1992 = vmatprep.mubr.msk.f32.mxu1 %vm2255_vm1, %v2254_v22  ;;  %v1631_v53 = vld [vmem:[%s2660_s8 + $0x8] sm:$0xff] }
 0x199   : > { %2000 = vmatprep.subr.mxu1 %v2254_v22 }
 0x19a   : > { %v822_v57 = vpop.trf.xlu0 }
 0x19b   : > { %1993 = vmatmul.mubr.msk.f32.vlgmr.msra.gmra.mrb[10].mxu1 %vm870_vm2, %v790_v55  ;;  %1998 = vmatmul.mubr.msk.f32.vlgmr.msra.gmra.mrb[4].mxu0 %vm870_vm2, %v822_v57  ;;  %v1630_v55 = vld [vmem:[%s2660_s8] sm:$0xff] }
 0x19c   : > { %2001 = vmatpush3.msra.mxu1 %v614_v56  ;;  %2002 = vmatprep.mubr.msk.f32.mxu1 %vm2255_vm1, %v2254_v22  ;;  %v1632_v56 = vld [vmem:[%s2660_s8 + $0x10] sm:$0xff] }
 0x19d   : > { %2010 = vmatprep.subr.mxu1 %v2254_v22  ;;  %2007 = vmatprep.mubr.msk.f32.mxu0 %vm2255_vm1, %v2254_v22 }
 0x19e   : > { %v854_v58 = vpop.trf.xlu0 }
 0x19f   : > { %2003 = vmatmul.mubr.msk.f32.vlgmr.msra.gmra.mrb[12].mxu1 %vm870_vm2, %v854_v58 }
 0x1a0   : > { %2012 = vmatprep.mubr.msk.f32.mxu1 %vm2255_vm1, %v2254_v22 }
 0x1b2   : > { %v633_v59 = vpop.permute.xlu1 %632 }
 0x1b3   : > { %v729_v60 = vadd.f32 %v1981_v42, %v633_v59 }
 0x1b5   : > { %2011 = vmatpush3.xpose.msk.msra.mxu1 %vm870_vm2, %v729_v60 }
 0x1b6   : > { %2020 = vmatprep.subr.mxu1 %v2254_v22  ;;  %v638_v34 = vpop.permute.xlu1 %637 }
 0x1b7   : > { %v734_v41 = vadd.f32 %v2522_v48, %v638_v34 }
 0x1ba   : > { %v643_v35 = vpop.permute.xlu1 %642 }
 0x1bb   : > { %v739_v42 = vadd.f32 %v2520_v47, %v643_v35 }
 0x1c6   : > { %v628_v61 = vpop.permute.xlu0 %627 }
 0x1c7   : > { %v724_v62 = vadd.f32 %v723_v45, %v628_v61 }
 0x1c9   : > { %2006 = vmatpush3.xpose.msk.msra.mxu0 %vm870_vm2, %v724_v62 }
 0x1ca   : > { %2015 = vmatprep.subr.mxu0 %v2254_v22 }
 0x26a   : > { %v940_v63 = vpop.f32.mrb[8].mxu1 }
 0x26b   : > { %v1989_v0 = vpop.f32.mrb[9].mxu1  ;;  %v1163_v3 = vsel %vm870_vm2, %v940_v63, -inf }
 0x26e   : > { %v1013_v1 = vpop.f32.mrb[10].mxu1  ;;  %v1086_v2 = vpop.f32.mrb[4].mxu0 }
 0x26f   : > { %v1164_v4 = vsel %vm870_vm2, %v1013_v1, -inf  ;;  %v1994_v5 = vpop.f32.mrb[11].mxu1  ;;  %v1999_v6 = vpop.f32.mrb[5].mxu0  ;;  %v1165_v9 = vsel %vm870_vm2, %v1086_v2, -inf }
 0x270   : > { %v1167_v7 = vmax.f32 %v1163_v3, %v1164_v4  ;;  %v1629_v3 = vld [vmem:[%s2656_s4 + $0x18] sm:$0xff] }
 0x272   : > { %v1159_v8 = vpop.f32.mrb[12].mxu1 }
 0x273   : > { %v1166_v10 = vsel %vm870_vm2, %v1159_v8, -inf  ;;  %v2004_v11 = vpop.f32.mrb[13].mxu1 }
 0x274   : > { %v1168_v12 = vmax.f32 %v1165_v9, %v1166_v10 }
 0x276   : > { %v1169_v13 = vmax.f32 %v1167_v7, %v1168_v12 }
 0x278   : > { %v1170_v14 = vsub.f32 %v940_v63, %v1169_v13  ;;  %v1171_v15 = vsub.f32 %v1013_v1, %v1169_v13  ;;  %v1172_v16 = vsub.f32 %v1086_v2, %v1169_v13  ;;  %v1173_v17 = vsub.f32 %v1159_v8, %v1169_v13  ;;  %v1627_v1 = vld [vmem:[%s2656_s4 + $0x8] sm:$0xff]  ;;  %v1628_v2 = vld [vmem:[%s2656_s4 + $0x10] sm:$0xff] }
 0x27a   : > { %v1174_v18 = vmul.f32 1.442695, %v1170_v14  ;;  %v1176_v19 = vmul.f32 1.442695, %v1171_v15  ;;  %v1178_v20 = vmul.f32 1.442695, %v1172_v16 }
 0x27b   : > { %v1180_v21 = vmul.f32 1.442695, %v1173_v17 }
 0x27c   : > { %2128 = vpow2.f32 %v1174_v18 }
 0x27d   : > { %2130 = vpow2.f32 %v1176_v19 }
 0x27e   : > { %2132 = vpow2.f32 %v1178_v20 }
 0x27f   : > { %2134 = vpow2.f32 %v1180_v21 }
 0x286   : > { %v2129_v23 = vpop.eup %2128 }
 0x287   : > { %v2131_v24 = vpop.eup %2130  ;;  %v1182_v25 = vsel %vm870_vm2, %v2129_v23, 0.0 }
 0x288   : > { %v2133_v26 = vpop.eup %2132  ;;  %v1183_v27 = vsel %vm870_vm2, %v2131_v24, 0.0 }
 0x289   : > { %v2135_v28 = vpop.eup %2134  ;;  %v1184_v29 = vadd.f32 %v1183_v27, %v1182_v25  ;;  %v1185_v30 = vsel %vm870_vm2, %v2133_v26, 0.0 }
 0x28a   : > { %v1187_v32 = vsel %vm870_vm2, %v2135_v28, 0.0 }
 0x28b   : > { %v1186_v31 = vadd.f32 %v1185_v30, %v1184_v29 }
 0x28d   : > { %v1188_v33 = vadd.f32 %v1187_v32, %v1186_v31 }
 0x28f   : > { %2136 = vrcp.f32 %v1188_v33 }
 0x299   : > { %v2137_v36 = vpop.eup %2136 }
 0x29a   : > { %v1190_v37 = vmul.f32 %v2137_v36, %v2129_v23  ;;  %v1191_v38 = vmul.f32 %v2137_v36, %v2131_v24  ;;  %v1192_v39 = vmul.f32 %v2137_v36, %v2133_v26  ;;  %v1193_v40 = vmul.f32 %v2137_v36, %v2135_v28 }
 0x29c   : > { %2008 = vmatmul.mubr.msk.f32.vlgmr.msra.gmra.mrb[6].mxu0 %vm870_vm2, %v1190_v37  ;;  %2013 = vmatmul.mubr.msk.f32.vlgmr.msra.gmra.mrb[14].mxu1 %vm870_vm2, %v1191_v38 }
 0x29d   : > { %2016 = vmatpush3.xpose.msk.msra.mxu0 %vm870_vm2, %v734_v41  ;;  %2021 = vmatpush3.xpose.msk.msra.mxu1 %vm870_vm2, %v739_v42 }
 0x29e   : > { %2017 = vmatprep.mubr.msk.f32.mxu0 %vm2255_vm1, %v2254_v22  ;;  %2022 = vmatprep.mubr.msk.f32.mxu1 %vm2255_vm1, %v2254_v22  ;;  %v1626_v22 = vld [vmem:[%s2656_s4] sm:$0xff] }
 0x2a0   : > { %2018 = vmatmul.mubr.msk.f32.vlgmr.msra.gmra.mrb[8].mxu0 %vm870_vm2, %v1192_v39  ;;  %2023 = vmatmul.mubr.msk.f32.vlgmr.msra.gmra.mrb[16].mxu1 %vm870_vm2, %v1193_v40 }
 0x2a1   : > { %2033 = vmatprep.mubr.msk.f32.mxu0 %vm391_vm0, %v1626_v22 }
 0x36f   : > { %v1266_v43 = vpop.f32.mrb[6].mxu0  ;;  %v1342_v44 = vpop.f32.mrb[14].mxu1 }
 0x370   : > { %v2114_v45 = vpack.i.bf16 %v1342_v44, %v1266_v43  ;;  %v2009_v46 = vpop.f32.mrb[7].mxu0  ;;  %v2014_v47 = vpop.f32.mrb[15].mxu1 }
 0x372   : > { %2115 = vxpose.xlu0.b32.start.end [1/1] (short) (narrow) %v2114_v45, 8 }
 0x373   : > { %v1418_v48 = vpop.f32.mrb[8].mxu0  ;;  %v1494_v49 = vpop.f32.mrb[16].mxu1 }
 0x374   : > { %v2121_v50 = vpack.i.bf16 %v1494_v49, %v1418_v48  ;;  %v2019_v51 = vpop.f32.mrb[9].mxu0  ;;  %v2024_v52 = vpop.f32.mrb[17].mxu1 }
 0x376   : > { %2122 = vxpose.xlu1.b32.start.end [1/1] (short) (narrow) %v2121_v50, 8 }
 0x394   : > { %1641 = vperm.xlu1 %2113, %v1631_v53  }
 0x398   : > { %1651 = vperm.xlu1 %2113, %v1633_v54  }
 0x39b   : > { %1636 = vperm.xlu0 %2112, %v1630_v55  }
 0x39f   : > { %1646 = vperm.xlu0 %2112, %v1632_v56  }
 0x3f2   : > { %v2116_v57 = vpop.trf.xlu0 }
 0x3f3   : > { %v2120_v58 = vunpack.i.h.bf16 %v2116_v57  ;;  %v2117_v59 = vunpack.i.l.bf16 %v2116_v57 }
 0x3f5   : > { %v2039_v60 = vpack.c.bf16 %v2120_v58, %v2117_v59 }
 0x3f6   : > { %v2123_v61 = vpop.trf.xlu1 }
 0x3f7   : > { %v2127_v62 = vunpack.i.h.bf16 %v2123_v61  ;;  %v2124_v63 = vunpack.i.l.bf16 %v2123_v61  ;;  %2040 = vmatprep.subr.bf16.mxu0 %v2039_v60 }
 0x3f8   : > { %2042 = vmatpush3.bf16.msra.mxu0 %v2039_v60 }
 0x3f9   : > { %v2043_v0 = vpack.c.bf16 %v2127_v62, %v2124_v63 }
 0x3fb   : > { %2044 = vmatprep.subr.bf16.mxu0 %v2043_v0 }
 0x3fc   : > { %2046 = vmatpush3.bf16.msra.mxu0 %v2043_v0 }
 0x3ff   : > { %2034 = vmatmul.mubr.msk.f32.vlgmr.msra.gmra.mrb[10].mxu0 %vm391_vm0, %v1627_v1 }
 0x400   : > { %2036 = vmatprep.mubr.msk.f32.mxu0 %vm391_vm0, %v1628_v2 }
 0x403   : > { %2037 = vmatmul.mubr.msk.f32.gmra.mrb[12].mxu0 %vm391_vm0, %v1629_v3 }
 0x413   : > { %v1642_v9 = vpop.permute.xlu1 %1641 }
 0x417   : > { %v1652_v14 = vpop.permute.xlu1 %1651 }
 0x41a   : > { %v1637_v5 = vpop.permute.xlu0 %1636 }
 0x41e   : > { %v1647_v12 = vpop.permute.xlu0 %1646 }
 0x4d2   : > { %v2035_v4 = vpop.f32.mrb[10].mxu0 }
 0x4d3   : > { %v1732_v6 = vpop.f32.mrb[11].mxu0  ;;  %v1738_v11 = vadd.f32 %v2035_v4, %v1642_v9 }
 0x4d4   : > { %v1733_v7 = vadd.f32 %v1732_v6, %v1637_v5 }
 0x4d6   : > { %v2038_v8 = vpop.f32.mrb[12].mxu0  ;;  %1751 = vxpose.xlu0.b32.start [1/4] (short) (narrow) %v1733_v7, 8 }
 0x4d7   : > { %v1742_v10 = vpop.f32.mrb[13].mxu0  ;;  %v1748_v15 = vadd.f32 %v2038_v8, %v1652_v14 }
 0x4d8   : > { %v1743_v13 = vadd.f32 %v1742_v10, %v1647_v12 }
 0x4da   : > { %1752 = vxpose.xlu0.b32.cont [2/4] (short) (narrow) %v1738_v11, 8 }
 0x4de   : > { %1753 = vxpose.xlu0.b32.cont [3/4] (short) (narrow) %v1743_v13, 8 }
 0x4e2   : > { %1754 = vxpose.xlu0.b32.end [4/4] (short) (narrow) %v1748_v15, 8 }
 0x556   : > { %v1767_v16 = vpop.trf.xlu0 }
 0x557   : > { %1783 = vst.msk [vmem:[%s361_s26] sm:$0xff] %vm391_vm0, %v1767_v16 }
 0x558   : > { %2181 = shalt.err (!%p2178_p6)
}
 0x559   : > { %s2182_s27 = scalar_lea.hbm %s2602_s20, 128  ;;  %s2186_s26 = scalar_lea.hbm %s2661_s9, 256 }
 0x55a   : > { %p2183_p4 = scmp.ne.s32.totalorder %s2602_s20, %s2182_s27  ;;  %p2187_p1 = scmp.lt.u32.totalorder %s2602_s20, %s2661_s9 }
 0x55b   : > { %p2188_p2 = scmp.lt.u32.totalorder %s2186_s26, %s2182_s27  ;;  %p2190_p8 = scmp.lt.u32.totalorder %s2182_s27, %s2602_s20 }
 0x55c   : > { %p2184_p10 = pnand %p2183_p4, %p2672_p9 }
 0x55d   : > { %p2189_p5 = por %p2188_p2, %p2187_p1 }
 0x55e   : > { %p2185_p12 = pneg %p2184_p10 }
 0x55f   : > { %p2191_p11 = por %p2190_p8, %p2189_p5 }
 0x561   : > { %p2192_p0 = pnand %p2191_p11, %p2185_p12 }
 0x563   : > { %2195 = shalt.err (!%p2192_p0)
}
 0x564   : > { %2049 = dma.vmem_to_hbm [thread:$0]  (%p2672_p9), %s2604_s29, 128, %s2602_s20, %s1785_s15  }
 0x565 PF: > { %s1811_s18 = sand.u32 1, %s2230_s30   ;;  %p2673_p7 = scmp.ne.s32.totalorder %s2668_s24, 0 }
 0x566   : > { %p2674_p13 = scmp.ge.s32.totalorder %s2250_s14, 2  ;;  %s1812_s12 = scalar_lea.sflag [#allocation4], %s1811_s18 }
 0x568   : > { %p2056_p3 = pnand %p2674_p13, %p2673_p7 }
 0x56a   : > { %2225 = dma.done.wait (!%p2056_p3), %s1812_s12, 128  }
 0x56b   : > { %2227 = vsyncadd (!%p2056_p3), %s1812_s12, 4294967168  ;;  %s25_s14 = sadd.s32 1, %s2250_s14   ;;  %s2675_s22 = sld [smem:[#allocation8_spill]] }
 0x56c   : > { %p22_p6 = scmp.ge.s32.totalorder %s25_s14, 4   ;;  %s2676_s30 = smov %s2234_s10 }
 0x56d   : > { %s2677_s10 = smov %s2238_s11  ;;  %s2678_s11 = smov %s2363_s23 }
 0x56e   : > { %s2679_s12 = smov %s2246_s13  ;;  %24 = sbr.rel (!%p22_p6) target bundleno = 6 (0x6), region = 101 }
 0x571   : > { %s2680_s13 = smov %s2675_s22 }
 0x575   :  { %1817 = vsyncpa [#allocation3], 1 }
 0x576   :  { %1819 = vsyncpa [#allocation3 + $0x1], 1 }
 0x577   :  { %1820 = vsyncpa [#allocation4], 1 }
 0x578   :  { %1822 = vsyncpa [#allocation4 + $0x1], 1 }

</bundles_post_ra>
